<compile_context>
chip_gen: v6e
topology: v6e:2x2x1
jax: 0.10.0
libtpu: 0.0.40
codegen_flags: <defaults>
</compile_context>

<pallas_src>
import numpy as np

import jax
import jax.numpy as jnp
from jax.experimental import pallas as pl
from jax.experimental.pallas import tpu as pltpu


HIDDEN_SIZE = 64
HID_PAD = 128                # lane-dense hidden width (cols 64..127 are zeros)
FLAT_SIZE = 16 * 3 * 3       # 144


# ----------------------------------------------------------------------------
# Single fused Pallas kernel: cast -> conv1 -> conv2 -> conv3 -> linear -> critic
# (convs pre-lowered to dense matrices; see conv3x3_to_dense below)
# ----------------------------------------------------------------------------
def _fused_forward_kernel(x_ref, t1_ref, b1_ref, t2_ref, b2_ref, t3_ref, b3_ref,
                          lw_ref, lb_ref, cw_ref, cb_ref,
                          hid_ref, crit_ref):
    def mm_bias(a, w_ref, b_ref, relu):
        # bf16 operands, f32 accumulation; bias + ReLU in f32.
        y = jnp.dot(a.astype(jnp.bfloat16), w_ref[...],
                    preferred_element_type=jnp.float32) + b_ref[...]
        return jnp.maximum(y, 0.0) if relu else y

    # dtype cast rides the VPU here (input may arrive as uint8 or float32).
    a = x_ref[...].astype(jnp.float32)      # [tb, Cin*H*W]  (channel-major flatten)
    a = mm_bias(a, t1_ref, b1_ref, True)    # conv1 + ReLU -> [tb, 8*5*5]
    a = mm_bias(a, t2_ref, b2_ref, True)    # conv2 + ReLU -> [tb, 8*3*3]
    a = mm_bias(a, t3_ref, b3_ref, True)    # conv3 + ReLU -> [tb, 16*3*3] == torch .view(-1, 144)
    h = mm_bias(a, lw_ref, lb_ref, True)    # linear_layer + ReLU -> [tb, 128] (cols 64.. are 0)
    hid_ref[...] = h                        # unmasked full-vreg store (lane-dense 128)
    # critic head: VPU multiply + cross-lane reduce instead of an N=1 MXU pass.
    crit_ref[...] = jnp.sum(h * cw_ref[...], axis=-1, keepdims=True) + cb_ref[...]


# ----------------------------------------------------------------------------
# Parameter prep (runs ONCE, outside jit): lower each conv to its exact dense map
# ----------------------------------------------------------------------------
def conv3x3_to_dense(w, b, H, W, stride):
    """Conv2d(k=3, pad=1, stride) with fixed weights as a dense matrix.

    Returns (T [Cin*H*W, Cout*Ho*Wo], bias_expanded [1, Cout*Ho*Wo], Ho, Wo) s.t.
      out_flat = x_flat @ T + bias_expanded
    where x_flat / out_flat are the NCHW channel-major flattens (PyTorch .view).
    """
    w = np.asarray(w, dtype=np.float32)
    b = np.asarray(b, dtype=np.float32)
    Cout, Cin, _, _ = w.shape
    Ho = (H - 1) // stride + 1
    Wo = (W - 1) // stride + 1
    T = np.zeros((Cin * H * W, Cout * Ho * Wo), np.float32)
    for co in range(Cout):
        for oh in range(Ho):
            for ow in range(Wo):
                out_idx = (co * Ho + oh) * Wo + ow
                for ci in range(Cin):
                    for ky in range(3):
                        ih = oh * stride - 1 + ky
                        if ih < 0 or ih >= H:
                            continue
                        for kx in range(3):
                            iw = ow * stride - 1 + kx
                            if iw < 0 or iw >= W:
                                continue
                            in_idx = (ci * H + ih) * W + iw
                            T[in_idx, out_idx] = w[co, ci, ky, kx]
    be = np.repeat(b, Ho * Wo).reshape(1, -1)
    return T, be, Ho, Wo


def prepare_params(params, H, W):
    """Build the kernel-ready weight set once, outside jit (weights in bf16)."""
    T1, b1, H1, W1 = conv3x3_to_dense(params["conv1_w"], params["conv1_b"], H, W, 2)
    T2, b2, H2, W2 = conv3x3_to_dense(params["conv2_w"], params["conv2_b"], H1, W1, 2)
    T3, b3, H3, W3 = conv3x3_to_dense(params["conv3_w"], params["conv3_b"], H2, W2, 1)
    assert T3.shape[1] == FLAT_SIZE, (T3.shape, FLAT_SIZE)

    # Lane-dense linear layer: pad 64 -> 128 output columns with zeros.
    lin_w = np.zeros((FLAT_SIZE, HID_PAD), np.float32)
    lin_w[:, :HIDDEN_SIZE] = np.asarray(params["lin_w"], np.float32)
    lin_b = np.zeros((1, HID_PAD), np.float32)
    lin_b[0, :HIDDEN_SIZE] = np.asarray(params["lin_b"], np.float32)

    # Critic head as a padded row vector (VPU multiply + lane-reduce in-kernel).
    crit_row = np.zeros((1, HID_PAD), np.float32)
    crit_row[0, :HIDDEN_SIZE] = np.asarray(params["crit_w"], np.float32).reshape(-1)
    crit_b = np.asarray(params["crit_b"], np.float32).reshape(1, 1)

    bf = jnp.bfloat16
    return {
        "t1": jnp.asarray(T1, bf), "b1": jnp.asarray(b1, jnp.float32),
        "t2": jnp.asarray(T2, bf), "b2": jnp.asarray(b2, jnp.float32),
        "t3": jnp.asarray(T3, bf), "b3": jnp.asarray(b3, jnp.float32),
        "lin_w": jnp.asarray(lin_w, bf), "lin_b": jnp.asarray(lin_b, jnp.float32),
        "crit_w": jnp.asarray(crit_row, jnp.float32),   # VPU row, stays f32
        "crit_b": jnp.asarray(crit_b, jnp.float32),
    }


# ----------------------------------------------------------------------------
# Forward wrapper (single pallas_call; padded batch, parallel grid on the batch axis)
# ----------------------------------------------------------------------------
def _round_up(x, m):
    return ((x + m - 1) // m) * m


def _vmem_bytes_estimate(block_b, k_in, in_itemsize, prepped):
    widths = (prepped["t1"].shape[1], prepped["t2"].shape[1],
              prepped["t3"].shape[1], HID_PAD)
    in_bytes = 2 * block_b * k_in * in_itemsize                 # double-buffered input
    out_bytes = 2 * block_b * (HID_PAD + 1) * 4                 # double-buffered outputs
    w_bytes = 2 * sum(int(np.prod(v.shape)) * v.dtype.itemsize for v in prepped.values())
    inter = block_b * sum(widths) * 4                           # live f32 intermediates
    return in_bytes + out_bytes + w_bytes + inter


def cnn_base_new_forward(prepped, inputs, rnn_hxs, masks, *, block_b=None):
    """Returns (critic_value [B,1], x [B,hidden_size], rnn_hxs), like the PyTorch module."""
    B = inputs.shape[0]
    # NO wrapper-side dtype cast: uint8 observations go straight into the kernel
    # (the cast happens on the VPU in-kernel). The reshape is a contiguous NCHW flatten.
    x = inputs.reshape(B, -1)
    k_in = x.shape[1]
    sub = 32 if x.dtype == jnp.uint8 else 8     # sublane tile (uint8 packs 4x)

    # Block / grid selection:
    #  - tiny B: one padded block.
    #  - larger B: >=2 programs (so the two v7x TensorCores both get work), cap 1024
    #    so the default scoped-VMEM limit is respected on every generation.
    if block_b is None:
        if B <= 2 * sub:
            block_b = _round_up(B, sub)
        else:
            block_b = min(1024, _round_up(pl.cdiv(B, 2), sub))
    else:
        block_b = _round_up(block_b, sub)

    # Pad the batch up to a multiple of block_b (never collapse to one giant block).
    B_pad = _round_up(B, block_b)
    if B_pad != B:
        x = jnp.pad(x, ((0, B_pad - B), (0, 0)))
    grid = (B_pad // block_b,)

    w_args = (prepped["t1"], prepped["b1"], prepped["t2"], prepped["b2"],
              prepped["t3"], prepped["b3"], prepped["lin_w"], prepped["lin_b"],
              prepped["crit_w"], prepped["crit_b"])

    in_specs = [pl.BlockSpec((block_b, k_in), lambda i: (i, 0))]
    in_specs += [pl.BlockSpec(w.shape, lambda i: (0, 0)) for w in w_args]

    cp_kwargs = dict(dimension_semantics=("parallel",))
    est = _vmem_bytes_estimate(block_b, k_in, x.dtype.itemsize, prepped)
    if est > 14 * (1 << 20):   # only raise the scoped-VMEM limit when actually needed
        cp_kwargs["vmem_limit_bytes"] = min(int(est * 1.5), 120 * (1 << 20))

    hidden_full, critic_full = pl.pallas_call(
        _fused_forward_kernel,
        out_shape=(jax.ShapeDtypeStruct((B_pad, HID_PAD), jnp.float32),
                   jax.ShapeDtypeStruct((B_pad, 1), jnp.float32)),
        grid=grid,
        in_specs=in_specs,
        out_specs=(pl.BlockSpec((block_b, HID_PAD), lambda i: (i, 0)),
                   pl.BlockSpec((block_b, 1), lambda i: (i, 0))),
        compiler_params=pltpu.CompilerParams(**cp_kwargs),
    )(x, *w_args)

    hidden = hidden_full[:B, :HIDDEN_SIZE]
    critic = critic_full[:B]

    # recurrent=False -> rnn_hxs passes through unchanged, masks unused.
    # TODO(synk): recurrent GRU path (_forward_gru) not implemented (recurrent=False here).
    return critic, hidden, rnn_hxs


# ----------------------------------------------------------------------------
# Synthetic parameters (shapes match the PyTorch module) + plain-JAX reference
# ----------------------------------------------------------------------------
def init_params(num_inputs, key):
    ks = jax.random.split(key, 8)

    def w(k, shape, scale=0.1):
        return (scale * jax.random.normal(k, shape)).astype(jnp.float32)

    return {
        "conv1_w": w(ks[0], (8, num_inputs, 3, 3)),
        "conv1_b": w(ks[1], (8,)),
        "conv2_w": w(ks[2], (8, 8, 3, 3)),
        "conv2_b": w(ks[3], (8,)),
        "conv3_w": w(ks[4], (16, 8, 3, 3)),
        "conv3_b": w(ks[5], (16,)),
        "lin_w": w(ks[6], (FLAT_SIZE, HIDDEN_SIZE)),       # stored [in, out]
        "lin_b": jnp.zeros((HIDDEN_SIZE,), jnp.float32),
        "crit_w": w(ks[7], (HIDDEN_SIZE, 1)),
        "crit_b": jnp.zeros((1,), jnp.float32),
    }


def _reference_forward(params, inputs):
    """Pure-JAX reference of the PyTorch forward (for the correctness check)."""
    x = inputs.astype(jnp.float32)

    def conv(x, w, b, stride):
        y = jax.lax.conv_general_dilated(
            x, w, window_strides=(stride, stride), padding=((1, 1), (1, 1)),
            dimension_numbers=("NCHW", "OIHW", "NCHW"))
        return jnp.maximum(y + b.reshape(1, -1, 1, 1), 0.0)

    x = conv(x, params["conv1_w"], params["conv1_b"], 2)
    x = conv(x, params["conv2_w"], params["conv2_b"], 2)
    x = conv(x, params["conv3_w"], params["conv3_b"], 1)
    x = x.reshape(x.shape[0], -1)
    h = jnp.maximum(x @ params["lin_w"] + params["lin_b"], 0.0)
    c = h @ params["crit_w"] + params["crit_b"]
    return c, h


if __name__ == "__main__":
    key = jax.random.PRNGKey(0)
    k_in, k_p, k_u8 = jax.random.split(key, 3)

    # MiniGrid-like shapes: channels=3, 9x9 spatial (9 -> 5 -> 3 -> 3, flat = 16*3*3 = 144).
    B, C, H, W = 2, 3, 9, 9
    inputs = jax.random.uniform(k_in, (B, C, H, W), jnp.float32)
    rnn_hxs = jnp.zeros((B, 1), jnp.float32)   # recurrent_hidden_state_size == 1
    masks = jnp.ones((B, 1), jnp.float32)

    params = init_params(C, k_p)
    prepped = prepare_params(params, H, W)     # one-time, outside jit

    fwd = jax.jit(cnn_base_new_forward)

    # --- float32 observations, tiny batch ---
    critic, emb, hxs = fwd(prepped, inputs, rnn_hxs, masks)
    jax.block_until_ready((critic, emb, hxs))
    assert critic.shape == (B, 1)
    assert emb.shape == (B, HIDDEN_SIZE)
    assert hxs.shape == (B, 1)
    ref_c, ref_h = _reference_forward(params, inputs)
    assert jnp.allclose(critic, ref_c, rtol=2e-2, atol=2e-2)
    assert jnp.allclose(emb, ref_h, rtol=2e-2, atol=2e-2)

    # --- uint8 observations (cast happens INSIDE the kernel), non-multiple-of-8 batch ---
    B2 = 50
    inputs_u8 = jax.random.randint(k_u8, (B2, C, H, W), 0, 6, jnp.int32).astype(jnp.uint8)
    rnn2 = jnp.zeros((B2, 1), jnp.float32)
    m2 = jnp.ones((B2, 1), jnp.float32)
    c2, e2, hxs2 = fwd(prepped, inputs_u8, rnn2, m2)
    jax.block_until_ready((c2, e2, hxs2))
    assert c2.shape == (B2, 1) and e2.shape == (B2, HIDDEN_SIZE)
    ref_c2, ref_h2 = _reference_forward(params, inputs_u8)
    assert jnp.allclose(c2, ref_c2, rtol=3e-2, atol=3e-2)
    assert jnp.allclose(e2, ref_h2, rtol=3e-2, atol=3e-2)

    print("KERNEL_OK")
</pallas_src>

<mosaic_0001>
module attributes {stable_mosaic.version = 11 : i64} {
  func.func @_fused_forward_kernel(%arg0: i32, %arg1: memref<8x243xf32, #tpu.memory_space<vmem>>, %arg2: memref<243x200xbf16, #tpu.memory_space<vmem>>, %arg3: memref<1x200xf32, #tpu.memory_space<vmem>>, %arg4: memref<200x72xbf16, #tpu.memory_space<vmem>>, %arg5: memref<1x72xf32, #tpu.memory_space<vmem>>, %arg6: memref<72x144xbf16, #tpu.memory_space<vmem>>, %arg7: memref<1x144xf32, #tpu.memory_space<vmem>>, %arg8: memref<144x128xbf16, #tpu.memory_space<vmem>>, %arg9: memref<1x128xf32, #tpu.memory_space<vmem>>, %arg10: memref<1x128xf32, #tpu.memory_space<vmem>>, %arg11: memref<1x1xf32, #tpu.memory_space<vmem>>, %arg12: memref<8x128xf32, #tpu.memory_space<vmem>>, %arg13: memref<8x1xf32, #tpu.memory_space<vmem>>) attributes {dimension_semantics = [#tpu.dimension_semantics<parallel>], iteration_bounds = array<i64: 1>, scalar_prefetch = 0 : i64, scratch_operands = 0 : i64, tpu.core_type = #tpu.core_type<tc>, window_params = [{transform_indices = @transform_0, window_bounds = array<i64: 8, 243>}, {pipeline_mode = #tpu.pipeline_mode<synchronous>, transform_indices = @transform_1, window_bounds = array<i64: 243, 200>}, {pipeline_mode = #tpu.pipeline_mode<synchronous>, transform_indices = @transform_2, window_bounds = array<i64: 1, 200>}, {pipeline_mode = #tpu.pipeline_mode<synchronous>, transform_indices = @transform_3, window_bounds = array<i64: 200, 72>}, {pipeline_mode = #tpu.pipeline_mode<synchronous>, transform_indices = @transform_4, window_bounds = array<i64: 1, 72>}, {pipeline_mode = #tpu.pipeline_mode<synchronous>, transform_indices = @transform_5, window_bounds = array<i64: 72, 144>}, {pipeline_mode = #tpu.pipeline_mode<synchronous>, transform_indices = @transform_6, window_bounds = array<i64: 1, 144>}, {pipeline_mode = #tpu.pipeline_mode<synchronous>, transform_indices = @transform_7, window_bounds = array<i64: 144, 128>}, {pipeline_mode = #tpu.pipeline_mode<synchronous>, transform_indices = @transform_8, window_bounds = array<i64: 1, 128>}, {pipeline_mode = #tpu.pipeline_mode<synchronous>, transform_indices = @transform_9, window_bounds = array<i64: 1, 128>}, {pipeline_mode = #tpu.pipeline_mode<synchronous>, transform_indices = @transform_10, window_bounds = array<i64: 1, 1>}, {transform_indices = @transform_11, window_bounds = array<i64: 8, 128>}, {transform_indices = @transform_12, window_bounds = array<i64: 8, 1>}]} {
    %c0 = arith.constant 0 : index
    %c0_0 = arith.constant 0 : index
    %0 = vector.load %arg1[%c0, %c0_0] : memref<8x243xf32, #tpu.memory_space<vmem>>, vector<8x243xf32>
    %1 = arith.truncf %0 : vector<8x243xf32> to vector<8x243xbf16>
    %c0_1 = arith.constant 0 : index
    %c0_2 = arith.constant 0 : index
    %2 = vector.load %arg2[%c0_1, %c0_2] : memref<243x200xbf16, #tpu.memory_space<vmem>>, vector<243x200xbf16>
    %cst = arith.constant dense<0.000000e+00> : vector<8x200xf32>
    %3 = tpu.matmul %1, %2, %cst {dimension_numbers = #tpu.dot_dimension_numbers<[1], [0], [0], [1], [0, 0, 1, 1], [], []>} : vector<8x243xbf16>, vector<243x200xbf16>, vector<8x200xf32> -> vector<8x200xf32>
    %c0_3 = arith.constant 0 : index
    %c0_4 = arith.constant 0 : index
    %4 = vector.load %arg3[%c0_3, %c0_4] : memref<1x200xf32, #tpu.memory_space<vmem>>, vector<1x200xf32>
    %5 = vector.broadcast %4 : vector<1x200xf32> to vector<8x200xf32>
    %6 = arith.addf %3, %5 : vector<8x200xf32>
    %cst_5 = arith.constant 0.000000e+00 : f32
    %7 = vector.broadcast %cst_5 : f32 to vector<8x200xf32>
    %8 = arith.maximumf %6, %7 : vector<8x200xf32>
    %9 = arith.truncf %8 : vector<8x200xf32> to vector<8x200xbf16>
    %c0_6 = arith.constant 0 : index
    %c0_7 = arith.constant 0 : index
    %10 = vector.load %arg4[%c0_6, %c0_7] : memref<200x72xbf16, #tpu.memory_space<vmem>>, vector<200x72xbf16>
    %cst_8 = arith.constant dense<0.000000e+00> : vector<8x72xf32>
    %11 = tpu.matmul %9, %10, %cst_8 {dimension_numbers = #tpu.dot_dimension_numbers<[1], [0], [0], [1], [0, 0, 1, 1], [], []>} : vector<8x200xbf16>, vector<200x72xbf16>, vector<8x72xf32> -> vector<8x72xf32>
    %c0_9 = arith.constant 0 : index
    %c0_10 = arith.constant 0 : index
    %12 = vector.load %arg5[%c0_9, %c0_10] : memref<1x72xf32, #tpu.memory_space<vmem>>, vector<1x72xf32>
    %13 = vector.broadcast %12 : vector<1x72xf32> to vector<8x72xf32>
    %14 = arith.addf %11, %13 : vector<8x72xf32>
    %cst_11 = arith.constant 0.000000e+00 : f32
    %15 = vector.broadcast %cst_11 : f32 to vector<8x72xf32>
    %16 = arith.maximumf %14, %15 : vector<8x72xf32>
    %17 = arith.truncf %16 : vector<8x72xf32> to vector<8x72xbf16>
    %c0_12 = arith.constant 0 : index
    %c0_13 = arith.constant 0 : index
    %18 = vector.load %arg6[%c0_12, %c0_13] : memref<72x144xbf16, #tpu.memory_space<vmem>>, vector<72x144xbf16>
    %cst_14 = arith.constant dense<0.000000e+00> : vector<8x144xf32>
    %19 = tpu.matmul %17, %18, %cst_14 {dimension_numbers = #tpu.dot_dimension_numbers<[1], [0], [0], [1], [0, 0, 1, 1], [], []>} : vector<8x72xbf16>, vector<72x144xbf16>, vector<8x144xf32> -> vector<8x144xf32>
    %c0_15 = arith.constant 0 : index
    %c0_16 = arith.constant 0 : index
    %20 = vector.load %arg7[%c0_15, %c0_16] : memref<1x144xf32, #tpu.memory_space<vmem>>, vector<1x144xf32>
    %21 = vector.broadcast %20 : vector<1x144xf32> to vector<8x144xf32>
    %22 = arith.addf %19, %21 : vector<8x144xf32>
    %cst_17 = arith.constant 0.000000e+00 : f32
    %23 = vector.broadcast %cst_17 : f32 to vector<8x144xf32>
    %24 = arith.maximumf %22, %23 : vector<8x144xf32>
    %25 = arith.truncf %24 : vector<8x144xf32> to vector<8x144xbf16>
    %c0_18 = arith.constant 0 : index
    %c0_19 = arith.constant 0 : index
    %26 = vector.load %arg8[%c0_18, %c0_19] : memref<144x128xbf16, #tpu.memory_space<vmem>>, vector<144x128xbf16>
    %cst_20 = arith.constant dense<0.000000e+00> : vector<8x128xf32>
    %27 = tpu.matmul %25, %26, %cst_20 {dimension_numbers = #tpu.dot_dimension_numbers<[1], [0], [0], [1], [0, 0, 1, 1], [], []>} : vector<8x144xbf16>, vector<144x128xbf16>, vector<8x128xf32> -> vector<8x128xf32>
    %c0_21 = arith.constant 0 : index
    %c0_22 = arith.constant 0 : index
    %28 = vector.load %arg9[%c0_21, %c0_22] : memref<1x128xf32, #tpu.memory_space<vmem>>, vector<1x128xf32>
    %29 = vector.broadcast %28 : vector<1x128xf32> to vector<8x128xf32>
    %30 = arith.addf %27, %29 : vector<8x128xf32>
    %cst_23 = arith.constant 0.000000e+00 : f32
    %31 = vector.broadcast %cst_23 : f32 to vector<8x128xf32>
    %32 = arith.maximumf %30, %31 : vector<8x128xf32>
    %c0_24 = arith.constant 0 : index
    %c0_25 = arith.constant 0 : index
    %33 = vector.load %arg12[%c0_24, %c0_25] : memref<8x128xf32, #tpu.memory_space<vmem>>, vector<8x128xf32>
    tpu.vector_store %arg12[%c0_24, %c0_25], %32 {strides = array<i32>} : memref<8x128xf32, #tpu.memory_space<vmem>>, vector<8x128xf32>,
    %c0_26 = arith.constant 0 : index
    %c0_27 = arith.constant 0 : index
    %34 = vector.load %arg10[%c0_26, %c0_27] : memref<1x128xf32, #tpu.memory_space<vmem>>, vector<1x128xf32>
    %35 = vector.broadcast %34 : vector<1x128xf32> to vector<8x128xf32>
    %36 = arith.mulf %32, %35 : vector<8x128xf32>
    %cst_28 = arith.constant dense<0.000000e+00> : vector<8xf32>
    %37 = vector.multi_reduction <add>, %36, %cst_28 [1] : vector<8x128xf32> to vector<8xf32>
    %38 = vector.shape_cast %37 : vector<8xf32> to vector<8x1xf32>
    %c0_29 = arith.constant 0 : index
    %c0_30 = arith.constant 0 : index
    %39 = vector.load %arg11[%c0_29, %c0_30] : memref<1x1xf32, #tpu.memory_space<vmem>>, vector<1x1xf32>
    %40 = vector.broadcast %39 : vector<1x1xf32> to vector<8x1xf32>
    %41 = arith.addf %38, %40 : vector<8x1xf32>
    %c0_31 = arith.constant 0 : index
    %c0_32 = arith.constant 0 : index
    %42 = vector.load %arg13[%c0_31, %c0_32] : memref<8x1xf32, #tpu.memory_space<vmem>>, vector<8x1xf32>
    tpu.vector_store %arg13[%c0_31, %c0_32], %41 {strides = array<i32>} : memref<8x1xf32, #tpu.memory_space<vmem>>, vector<8x1xf32>,
    return
  }
  func.func @transform_0(%arg0: i32) -> (i32, i32) {
    %c0_i32 = arith.constant 0 : i32
    %c0_i32_0 = arith.constant 0 : i32
    return %arg0, %c0_i32 : i32, i32
  }
  func.func @transform_1(%arg0: i32) -> (i32, i32) {
    %c0_i32 = arith.constant 0 : i32
    %c0_i32_0 = arith.constant 0 : i32
    %c0_i32_1 = arith.constant 0 : i32
    return %c0_i32, %c0_i32_0 : i32, i32
  }
  func.func @transform_2(%arg0: i32) -> (i32, i32) {
    %c0_i32 = arith.constant 0 : i32
    %c0_i32_0 = arith.constant 0 : i32
    %c0_i32_1 = arith.constant 0 : i32
    return %c0_i32, %c0_i32_0 : i32, i32
  }
  func.func @transform_3(%arg0: i32) -> (i32, i32) {
    %c0_i32 = arith.constant 0 : i32
    %c0_i32_0 = arith.constant 0 : i32
    %c0_i32_1 = arith.constant 0 : i32
    return %c0_i32, %c0_i32_0 : i32, i32
  }
  func.func @transform_4(%arg0: i32) -> (i32, i32) {
    %c0_i32 = arith.constant 0 : i32
    %c0_i32_0 = arith.constant 0 : i32
    %c0_i32_1 = arith.constant 0 : i32
    return %c0_i32, %c0_i32_0 : i32, i32
  }
  func.func @transform_5(%arg0: i32) -> (i32, i32) {
    %c0_i32 = arith.constant 0 : i32
    %c0_i32_0 = arith.constant 0 : i32
    %c0_i32_1 = arith.constant 0 : i32
    return %c0_i32, %c0_i32_0 : i32, i32
  }
  func.func @transform_6(%arg0: i32) -> (i32, i32) {
    %c0_i32 = arith.constant 0 : i32
    %c0_i32_0 = arith.constant 0 : i32
    %c0_i32_1 = arith.constant 0 : i32
    return %c0_i32, %c0_i32_0 : i32, i32
  }
  func.func @transform_7(%arg0: i32) -> (i32, i32) {
    %c0_i32 = arith.constant 0 : i32
    %c0_i32_0 = arith.constant 0 : i32
    %c0_i32_1 = arith.constant 0 : i32
    return %c0_i32, %c0_i32_0 : i32, i32
  }
  func.func @transform_8(%arg0: i32) -> (i32, i32) {
    %c0_i32 = arith.constant 0 : i32
    %c0_i32_0 = arith.constant 0 : i32
    %c0_i32_1 = arith.constant 0 : i32
    return %c0_i32, %c0_i32_0 : i32, i32
  }
  func.func @transform_9(%arg0: i32) -> (i32, i32) {
    %c0_i32 = arith.constant 0 : i32
    %c0_i32_0 = arith.constant 0 : i32
    %c0_i32_1 = arith.constant 0 : i32
    return %c0_i32, %c0_i32_0 : i32, i32
  }
  func.func @transform_10(%arg0: i32) -> (i32, i32) {
    %c0_i32 = arith.constant 0 : i32
    %c0_i32_0 = arith.constant 0 : i32
    %c0_i32_1 = arith.constant 0 : i32
    return %c0_i32, %c0_i32_0 : i32, i32
  }
  func.func @transform_11(%arg0: i32) -> (i32, i32) {
    %c0_i32 = arith.constant 0 : i32
    %c0_i32_0 = arith.constant 0 : i32
    return %arg0, %c0_i32 : i32, i32
  }
  func.func @transform_12(%arg0: i32) -> (i32, i32) {
    %c0_i32 = arith.constant 0 : i32
    %c0_i32_0 = arith.constant 0 : i32
    return %arg0, %c0_i32 : i32, i32
  }
}

</mosaic_0001>

<bundles_post_ra>
// kernel: cnn_base_new_forward.1
= control target key start
LH: loop header
LB: loop body
LE: loop exit
PB: predicated region body
PF: predicated region fallthrough
CT: control target
= control target key end

     0   :  { %v892_v2 = vmov 0   ;;  %vm249_vm0 = vcmask 1040384   ;;  %vm250_vm1 = vcmask 1041408   ;;  %vm245_vm2 = vcmask 941056   ;;  %s1216_s1 = inlined_call_operand.vmem [shape: bf16[243,200], index: 1, kind: input, shape index: {}]   ;;  %s1217_s0 = inlined_call_operand.vmem [shape: f32[8,243], index: 0, kind: input, shape index: {}]   ;;  %s1218_s3 = inlined_call_operand.vmem [shape: bf16[200,72], index: 3, kind: input, shape index: {}]   ;;  %s1219_s5 = inlined_call_operand.vmem [shape: bf16[72,144], index: 5, kind: input, shape index: {}]   ;;  %s1220_s2 = inlined_call_operand.vmem [shape: f32[1,200], index: 2, kind: input, shape index: {}]   ;;  %s1221_s7 = inlined_call_operand.vmem [shape: bf16[144,128], index: 7, kind: input, shape index: {}]   ;;  %s1222_s4 = inlined_call_operand.vmem [shape: f32[1,72], index: 4, kind: input, shape index: {}]   ;;  %s1223_s6 = inlined_call_operand.vmem [shape: f32[1,144], index: 6, kind: input, shape index: {}]   ;;  %s1224_s10 = inlined_call_operand.<no memory space> [shape: f32[1,1], index: 10, kind: input, shape index: {}]   ;;  %s1225_s8 = inlined_call_operand.vmem [shape: f32[1,128], index: 8, kind: input, shape index: {}]   ;;  %s1226_s9 = inlined_call_operand.vmem [shape: f32[1,128], index: 9, kind: input, shape index: {}]   ;;  %s1227_s11 = inlined_call_operand.vmem [shape: f32[8,128], index: 11, kind: output, shape index: {0}]   ;;  %s1228_s12 = inlined_call_operand.vmem [shape: f32[8,1], index: 12, kind: output, shape index: {1}]  }
   0x1   :  { %v809_v0 = vld [vmem:[%s1216_s1 + $0x74] ss:$8 sps:$4 sm:$0xff]   ;;  %v811_v1 = vld [vmem:[%s1216_s1 + $0x70] ss:$8 sps:$4 sm:$0xff]   ;;  %419 = vmatprep.subr.bf16.mxu1 %v892_v2  ;;  %v812_v3 = vld [vmem:[%s1216_s1 + $0x64] ss:$8 sps:$4 sm:$0xff]   ;;  %v80_v59 = vlaneseq }
   0x2   :  { %259 = vmatprep.subr.bf16.mxu0 %v809_v0  ;;  %v814_v4 = vld [vmem:[%s1216_s1 + $0x60] ss:$8 sps:$4 sm:$0xff]   ;;  %v815_v5 = vld [vmem:[%s1216_s1 + $0x54] ss:$8 sps:$4 sm:$0xff]   ;;  %v817_v6 = vld [vmem:[%s1216_s1 + $0x50] ss:$8 sps:$4 sm:$0xff]  }
   0x3   :  { %260 = vmatpush1.bf16.msra.mxu0 %v811_v1  ;;  %v818_v7 = vld [vmem:[%s1216_s1 + $0x44] ss:$8 sps:$4 sm:$0xff]   ;;  %v820_v8 = vld [vmem:[%s1216_s1 + $0x40] ss:$8 sps:$4 sm:$0xff]   ;;  %v821_v9 = vld [vmem:[%s1216_s1 + $0x34] ss:$8 sps:$4 sm:$0xff]  }
   0x4   :  { %261 = vmatprep.subr.bf16.mxu0 %v812_v3  ;;  %v823_v10 = vld [vmem:[%s1216_s1 + $0x30] ss:$8 sps:$4 sm:$0xff]   ;;  %v824_v11 = vld [vmem:[%s1216_s1 + $0x24] ss:$8 sps:$4 sm:$0xff]   ;;  %v826_v12 = vld [vmem:[%s1216_s1 + $0x20] ss:$8 sps:$4 sm:$0xff]  }
   0x5   :  { %v827_v13 = vld [vmem:[%s1216_s1 + $0x14] ss:$8 sps:$4 sm:$0xff]   ;;  %v44_v15 = vld [vmem:[%s1217_s0 + $0x8] sm:$0xff]  ;;  %v893_v16 = vmov 65535   ;;  %v829_v20 = vld [vmem:[%s1216_s1 + $0x10] ss:$8 sps:$4 sm:$0xff]  }
   0x6   :  { %v77_v14 = vld [vmem:[%s1216_s1 + $0xf0] sm:$0x33]  ;;  %v251_v17 = vsel %vm249_vm0, 4294967295, %v893_v16  ;;  %v46_v18 = vpack.c.bf16 %v44_v15, %v44_v15  ;;  %v856_v19 = vld [vmem:[%s1218_s3 + $0x38] sm:$0xff]   ;;  %v830_v21 = vld [vmem:[%s1216_s1 + $0x4] ss:$8 sps:$4 sm:$0xff]  }
   0x7   :  { %262 = vmatpush1.bf16.msra.mxu0 %v814_v4  ;;  %v765_v22 = vcombine.high %v77_v14, %v77_v14  ;;  %420 = vmatpush1.bf16.msra.mxu1 %v856_v19  ;;  %v857_v23 = vld [vmem:[%s1218_s3 + $0x30] sm:$0xff]   ;;  %v252_v24 = vsel %vm250_vm1, %v251_v17, 0  ;;  %v832_v25 = vld [vmem:[%s1216_s1] ss:$8 sps:$4 sm:$0xff]   ;;  %v764_v26 = vcombine.low %v77_v14, %v77_v14  ;;  %v835_v30 = vld [vmem:[%s1216_s1 + $0xe4] ss:$8 sps:$4 sm:$0xff]  }
   0x8   :  { %263 = vmatprep.subr.bf16.mxu0 %v815_v5  ;;  %766 = vmatprep.mubr.msk.bf16.mxu0 %vm245_vm2, %v46_v18  ;;  %v858_v28 = vld [vmem:[%s1218_s3 + $0x28] sm:$0xff]   ;;  %v859_v31 = vld [vmem:[%s1218_s3 + $0x20] sm:$0xff]   ;;  %v838_v33 = vld [vmem:[%s1216_s1 + $0xd4] ss:$8 sps:$4 sm:$0xff]   ;;  %vm415_vm3 = vcmask 1043456   ;;  %v1117_v60 = vshrl.u32 %v80_v59, 7 }
   0x9   :  { %421 = vmatprep.subr.bf16.mxu1 %v892_v2  ;;  %v257_v27 = vand.u32 %v765_v22, %v252_v24  ;;  %v254_v29 = vand.u32 %v764_v26, %v252_v24  ;;  %v837_v32 = vld [vmem:[%s1216_s1 + $0xe0] ss:$8 sps:$4 sm:$0xff]   ;;  %v860_v34 = vld [vmem:[%s1218_s3 + $0x18] sm:$0xff]   ;;  %v841_v36 = vld [vmem:[%s1216_s1 + $0xc4] ss:$8 sps:$4 sm:$0xff]   ;;  %vm411_vm4 = vcmask 588800  }
   0xa   :  { %v840_v35 = vld [vmem:[%s1216_s1 + $0xd0] ss:$8 sps:$4 sm:$0xff]   ;;  %v843_v38 = vld [vmem:[%s1216_s1 + $0xc0] ss:$8 sps:$4 sm:$0xff]   ;;  %v844_v39 = vld [vmem:[%s1216_s1 + $0xb4] ss:$8 sps:$4 sm:$0xff]  }
   0xb   :  { %264 = vmatpush1.bf16.msra.mxu0 %v817_v6  ;;  %422 = vmatpush1.bf16.msra.mxu1 %v857_v23  ;;  %v861_v37 = vld [vmem:[%s1218_s3 + $0x10] sm:$0xff]   ;;  %v862_v40 = vld [vmem:[%s1218_s3 + $0x8] sm:$0xff]   ;;  %v863_v43 = vld [vmem:[%s1218_s3] sm:$0xff]   ;;  %v82_v61 = vsub.s32 0, %v1117_v60  ;;  %v86_v63 = vsub.s32 1, %v1117_v60  ;;  %vm660_vm5 = vcmask 130048  }
   0xc   :  { %265 = vmatprep.subr.bf16.mxu0 %v818_v7  ;;  %423 = vmatprep.subr.bf16.mxu1 %v892_v2  ;;  %v846_v41 = vld [vmem:[%s1216_s1 + $0xb0] ss:$8 sps:$4 sm:$0xff]   ;;  %v847_v42 = vld [vmem:[%s1216_s1 + $0xa4] ss:$8 sps:$4 sm:$0xff]   ;;  %v864_v44 = vld [vmem:[%s1218_s3 + $0x60] ss:$0 sps:$4 sm:$0xff]  }
   0xd   :  { %v849_v45 = vld [vmem:[%s1216_s1 + $0xa0] ss:$8 sps:$4 sm:$0xff]   ;;  %v850_v46 = vld [vmem:[%s1216_s1 + $0x94] ss:$8 sps:$4 sm:$0xff]   ;;  %v417_v47 = vsel %vm415_vm3, %v864_v44, 0  ;;  %vm724_vm6 = vcmask 7168  }
   0xe   :  { %v852_v48 = vld [vmem:[%s1216_s1 + $0x90] ss:$8 sps:$4 sm:$0xff]   ;;  %v853_v49 = vld [vmem:[%s1216_s1 + $0x84] ss:$8 sps:$4 sm:$0xff]   ;;  %v855_v51 = vld [vmem:[%s1216_s1 + $0x80] ss:$8 sps:$4 sm:$0xff]  }
   0xf   :  { %266 = vmatpush1.bf16.msra.mxu0 %v820_v8  ;;  %424 = vmatpush1.bf16.msra.mxu1 %v858_v28  ;;  %v865_v50 = vld [vmem:[%s1218_s3 + $0x58] sm:$0xff]   ;;  %v43_v52 = vld [vmem:[%s1217_s0] sm:$0xff]  ;;  %v866_v53 = vld [vmem:[%s1218_s3 + $0x50] sm:$0xff]  }
  0x10   :  { %267 = vmatprep.subr.bf16.mxu0 %v821_v9  ;;  %425 = vmatprep.subr.bf16.mxu1 %v892_v2  ;;  %v45_v54 = vpack.c.bf16 %v43_v52, %v43_v52  ;;  %v867_v55 = vld [vmem:[%s1218_s3 + $0x48] sm:$0xff]   ;;  %v868_v56 = vld [vmem:[%s1218_s3 + $0x40] sm:$0xff]   ;;  %v873_v15 = vld [vmem:[%s1219_s5 + $0x34] ss:$8 sps:$4 sm:$0xff]   ;;  %v18_v52 = vstv %s1224_s10 }
  0x11   :  { %v469_v57 = vld [vmem:[%s1219_s5 + $0x40] sm:$0xff]  ;;  %v871_v16 = vld [vmem:[%s1219_s5 + $0x30] ss:$8 sps:$4 sm:$0xff]   ;;  %v879_v19 = vld [vmem:[%s1219_s5 + $0x14] ss:$8 sps:$4 sm:$0xff]  }
  0x12   :  { %v791_v58 = vcombine.high %v469_v57, %v469_v57  ;;  %v78_v62 = vld [vmem:[%s1220_s2] sm:$0x3]  ;;  %v790_v9 = vcombine.low %v469_v57, %v469_v57  ;;  %v876_v17 = vld [vmem:[%s1219_s5 + $0x24] ss:$8 sps:$4 sm:$0xff]   ;;  %v883_v23 = vld [vmem:[%s1221_s7 + $0x38] sm:$0xff]  }
  0x13   :  { %268 = vmatpush1.bf16.msra.mxu0 %v823_v10  ;;  %426 = vmatpush1.bf16.msra.mxu1 %v859_v31  ;;  %v83_v0 = vrot.slane %v78_v62, %v82_v61  ;;  %v87_v1 = vrot.slane %v78_v62, %v86_v63  ;;  %v874_v18 = vld [vmem:[%s1219_s5 + $0x20] ss:$8 sps:$4 sm:$0xff]   ;;  %v884_v24 = vld [vmem:[%s1221_s7 + $0x30] sm:$0xff]   ;;  %19 = vst [vmem:[#allocation2] sm:$0x1] %v18_v52 }
  0x14   :  { %269 = vmatprep.subr.bf16.mxu0 %v824_v11  ;;  %427 = vmatprep.subr.bf16.mxu1 %v892_v2  ;;  %v531_v14 = vsel %vm415_vm3, %v790_v9, 0  ;;  %v880_v22 = vld [vmem:[%s1219_s5] ss:$8 sps:$4 sm:$0xff]   ;;  %v888_v28 = vld [vmem:[%s1221_s7 + $0x10] sm:$0xff]  }
  0x15   :  { %v886_v26 = vld [vmem:[%s1221_s7 + $0x20] sm:$0xff]  }
  0x16   :  { %v805_v57 = vld [vmem:[%s1226_s9] ss:$0 sm:$0xff] }
  0x17   :  { %270 = vmatpush1.bf16.msra.mxu0 %v826_v12  ;;  %428 = vmatpush1.bf16.msra.mxu1 %v860_v34 }
  0x18   :  { %271 = vmatprep.subr.bf16.mxu0 %v827_v13  ;;  %429 = vmatprep.subr.bf16.mxu1 %v892_v2 }
  0x1a   :  { %v806_v62 = vld [vmem:[#allocation2] ss:$0 sm:$0xff] }
  0x1b   :  { %272 = vmatpush1.bf16.msra.mxu0 %v829_v20  ;;  %430 = vmatpush1.bf16.msra.mxu1 %v861_v37  ;;  %v877_v20 = vld [vmem:[%s1219_s5 + $0x10] ss:$8 sps:$4 sm:$0xff]  }
  0x1c   :  { %273 = vmatprep.subr.bf16.mxu0 %v830_v21  ;;  %431 = vmatprep.subr.bf16.mxu1 %v892_v2  ;;  %v882_v21 = vld [vmem:[%s1219_s5 + $0x4] ss:$8 sps:$4 sm:$0xff]  }
  0x1f   :  { %274 = vmatpush1.bf16.msra.mxu0 %v832_v25  ;;  %432 = vmatpush1.bf16.msra.mxu1 %v862_v40  ;;  %v885_v25 = vld [vmem:[%s1221_s7 + $0x28] sm:$0xff]   ;;  %v470_v40 = vld [vmem:[%s1223_s6] sm:$0x3] }
  0x20   :  { %275 = vmatprep.subr.bf16.mxu0 %v257_v27  ;;  %433 = vmatprep.subr.bf16.mxu1 %v892_v2  ;;  %v887_v27 = vld [vmem:[%s1221_s7 + $0x18] sm:$0xff]  }
  0x23   :  { %276 = vmatpush2.bf16.msra.mxu0 %v254_v29  ;;  %434 = vmatpush1.bf16.msra.mxu1 %v863_v43  ;;  %v889_v29 = vld [vmem:[%s1221_s7 + $0x8] sm:$0xff]  }
  0x24   :  { %277 = vmatprep.subr.bf16.mxu0 %v835_v30  ;;  %441 = vmatprep.subr.bf16.mxu1 %v892_v2  ;;  %v767_v30 = vld [vmem:[%s1222_s4] ss:$0 sm:$0xff] }
  0x27   :  { %278 = vmatpush2.bf16.msra.mxu0 %v837_v32  ;;  %442 = vmatpush2.bf16.msra.mxu1 %v417_v47 }
  0x28   :  { %279 = vmatprep.subr.bf16.mxu0 %v838_v33  ;;  %443 = vmatprep.subr.bf16.mxu1 %v892_v2 }
  0x2b   :  { %280 = vmatpush2.bf16.msra.mxu0 %v840_v35  ;;  %444 = vmatpush2.bf16.msra.mxu1 %v865_v50 }
  0x2c   :  { %281 = vmatprep.subr.bf16.mxu0 %v841_v36  ;;  %445 = vmatprep.subr.bf16.mxu1 %v892_v2 }
  0x2f   :  { %282 = vmatpush2.bf16.msra.mxu0 %v843_v38  ;;  %446 = vmatpush2.bf16.msra.mxu1 %v866_v53  ;;  %v890_v38 = vld [vmem:[%s1221_s7] sm:$0xff]  }
  0x30   :  { %283 = vmatprep.subr.bf16.mxu0 %v844_v39  ;;  %447 = vmatprep.subr.bf16.mxu1 %v892_v2  ;;  %v891_v39 = vld [vmem:[%s1221_s7 + $0x40] sm:$0xff]  }
  0x31   :  { %v794_v53 = vld [vmem:[%s1225_s8] ss:$0 sm:$0xff] }
  0x33   :  { %284 = vmatpush2.bf16.msra.mxu0 %v846_v41  ;;  %448 = vmatpush2.bf16.msra.mxu1 %v867_v55  ;;  %v475_v41 = vrot.slane %v470_v40, %v82_v61 }
  0x34   :  { %285 = vmatprep.subr.bf16.mxu0 %v847_v42  ;;  %449 = vmatprep.subr.bf16.mxu1 %v892_v2  ;;  %v479_v42 = vrot.slane %v470_v40, %v86_v63 }
  0x37   :  { %286 = vmatpush2.bf16.msra.mxu0 %v849_v45  ;;  %450 = vmatpush2.bf16.msra.mxu1 %v868_v56 }
  0x38   :  { %287 = vmatprep.subr.bf16.mxu0 %v850_v46  ;;  %792 = vmatprep.subr.msk.bf16.mxu1 %vm415_vm3, %v791_v58 }
  0x3b   :  { %288 = vmatpush2.bf16.msra.mxu0 %v852_v48 }
  0x3c   :  { %289 = vmatprep.subr.bf16.mxu0 %v853_v49 }
  0x3f   :  { %290 = vmatpush2.bf16.msra.mxu0 %v855_v51 }
  0x40   :  { %664 = vmatprep.subr.bf16.mxu0 %v892_v2 }
  0x42   :  { %292 = vmatmul.mubr.bf16.vlgmr.msra.gmra.mxu0 %v45_v54 }
  0x43   :  { %665 = vmatpush1.bf16.msra.mxu0 %v883_v23 }
  0x44   :  { %666 = vmatprep.subr.bf16.mxu0 %v892_v2 }
  0x47   :  { %667 = vmatpush1.bf16.msra.mxu0 %v884_v24 }
  0x48   :  { %668 = vmatprep.subr.bf16.mxu0 %v892_v2 }
  0x4b   :  { %669 = vmatpush1.bf16.msra.mxu0 %v885_v25 }
  0x4c   :  { %670 = vmatprep.subr.bf16.mxu0 %v892_v2 }
  0x4f   :  { %671 = vmatpush1.bf16.msra.mxu0 %v886_v26 }
  0x50   :  { %672 = vmatprep.subr.bf16.mxu0 %v892_v2 }
  0x53   :  { %673 = vmatpush1.bf16.msra.mxu0 %v887_v27 }
  0x54   :  { %674 = vmatprep.subr.bf16.mxu0 %v892_v2 }
  0x57   :  { %675 = vmatpush1.bf16.msra.mxu0 %v888_v28 }
  0x58   :  { %676 = vmatprep.subr.bf16.mxu0 %v892_v2 }
  0x5b   :  { %677 = vmatpush1.bf16.msra.mxu0 %v889_v29 }
  0x5c   :  { %678 = vmatprep.subr.bf16.mxu0 %v892_v2 }
  0x5f   :  { %679 = vmatpush1.bf16.msra.mxu0 %v890_v38 }
  0x60   :  { %694 = vmatprep.subr.bf16.mxu0 %v892_v2 }
  0x63   :  { %695 = vmatpush2.bf16.msra.mxu0 %v891_v39 }
 0x102   :  { %v293_v3 = vpop.f32.mrf.mxu0 }
 0x103   :  { %v294_v4 = vadd.f32 %v293_v3, %v83_v0 }
 0x104   :  { %v295_v5 = vpop.f32.mrf.mxu0 }
 0x105   :  { %v296_v6 = vadd.f32 %v295_v5, %v87_v1  ;;  %v300_v7 = vmax.f32 %v294_v4, 0.0 }
 0x106   :  { %v297_v8 = vpop.f32.mrf.mxu0 }
 0x107   :  { %v301_v10 = vmax.f32 %v296_v6, 0.0  ;;  %v302_v13 = vpack.c.bf16 %v300_v7, %v300_v7 }
 0x108   :  { %v298_v11 = vpop.f32.mrf.mxu0 }
 0x109   :  { %v303_v12 = vpack.c.bf16 %v301_v10, %v301_v10 }
 0x10b   :  { %781 = vmatprep.mubr.msk.bf16.mxu1 %vm411_vm4, %v303_v12 }
 0x10c   :  { %452 = vmatmul.mubr.bf16.vlgmr.msra.gmra.mxu1 %v302_v13 }
 0x10d   :  { %543 = vmatpush1.bf16.msra.mxu1 %v531_v14  ;;  %568 = vmatprep.mubr.bf16.mxu1 %v892_v2 }
 0x10e   :  { %544 = vmatprep.subr.bf16.mxu1 %v873_v15 }
 0x111   :  { %545 = vmatpush1.bf16.msra.mxu1 %v871_v16 }
 0x112   :  { %546 = vmatprep.subr.bf16.mxu1 %v876_v17 }
 0x115   :  { %547 = vmatpush1.bf16.msra.mxu1 %v874_v18 }
 0x116   :  { %548 = vmatprep.subr.bf16.mxu1 %v879_v19 }
 0x119   :  { %549 = vmatpush1.bf16.msra.mxu1 %v877_v20 }
 0x11a   :  { %550 = vmatprep.subr.bf16.mxu1 %v882_v21 }
 0x11d   :  { %551 = vmatpush1.bf16.msra.mxu1 %v880_v22 }
 0x1cc   :  { %v453_v31 = vpop.f32.mrf.mxu1 }
 0x1cd   :  { %v454_v32 = vadd.f32 %v767_v30, %v453_v31 }
 0x1ce   :  { %v455_v33 = vpop.f32.mrf.mxu1 }
 0x1cf   :  { %v459_v34 = vmax.f32 %v454_v32, 0.0 }
 0x1d0   :  { %v456_v35 = vpop.f32.mrf.mxu1 }
 0x1d1   :  { %v460_v36 = vpack.c.bf16 %v459_v34, %v459_v34 }
 0x1d2   :  { %v457_v37 = vpop.f32.mrf.mxu1 }
 0x1d3   :  { %793 = vmatmul.mubr.msk.bf16.vlgmr.msra.gmra.mxu1 %vm411_vm4, %v460_v36 }
 0x293   :  { %v570_v43 = vpop.f32.mrf.mxu1 }
 0x294   :  { %v571_v44 = vadd.f32 %v570_v43, %v475_v41 }
 0x295   :  { %v572_v45 = vpop.f32.mrf.mxu1 }
 0x296   :  { %v573_v46 = vadd.f32 %v572_v45, %v479_v42  ;;  %v577_v2 = vmax.f32 %v571_v44, 0.0 }
 0x297   :  { %v574_v47 = vpop.f32.mrf.mxu1 }
 0x298   :  { %v578_v48 = vmax.f32 %v573_v46, 0.0  ;;  %v579_v51 = vpack.c.bf16 %v577_v2, %v577_v2 }
 0x299   :  { %v575_v49 = vpop.f32.mrf.mxu1 }
 0x29a   :  { %v580_v50 = vpack.c.bf16 %v578_v48, %v578_v48 }
 0x29c   :  { %804 = vmatprep.mubr.msk.bf16.mxu0 %vm660_vm5, %v580_v50 }
 0x29d   :  { %697 = vmatmul.mubr.bf16.vlgmr.msra.gmra.mxu0 %v579_v51 }
 0x35d   :  { %v698_v54 = vpop.f32.mrf.mxu0 }
 0x35e   :  { %v699_v55 = vadd.f32 %v794_v53, %v698_v54 }
 0x35f   :  { %v700_v56 = vpop.f32.mrf.mxu0 }
 0x360   :  { %v704_v58 = vmax.f32 %v699_v55, 0.0 }
 0x361   :  { %v701_v59 = vpop.f32.mrf.mxu0 }
 0x362   :  { %705 = vst [vmem:[%s1227_s11] sm:$0xff] %v704_v58  ;;  %v713_v60 = vmul.f32 %v805_v57, %v704_v58 }
 0x363   :  { %v702_v61 = vpop.f32.mrf.mxu0 }
 0x364   :  { %714 = vadd.xlane.f32.xlu0 %v713_v60 }
 0x3ed   :  { %v715_v63 = vpop.xlane.xlu0 %714 }
 0x3ee   :  { %v723_v0 = vadd.f32 %v806_v62, %v715_v63 }
 0x3f0   :  { %725 = vst.msk [vmem:[%s1228_s12] sm:$0xff] %vm724_vm6, %v723_v0 }

</bundles_post_ra>
